<compile_context>
chip_gen: v7x
topology: tpu7x:2x2x1
jax: 0.10.0
libtpu: 0.0.40
codegen_flags: <defaults>
</compile_context>

<pallas_src>
import functools

import jax
import jax.numpy as jnp
from jax import lax
from jax.experimental import pallas as pl
from jax.experimental.pallas import tpu as pltpu

LANE = 128      # f32 lane tile
SUBLANE = 8     # f32 sublane tile


def _round_up(x, m):
    return (x + m - 1) // m * m


# ---------------------------------------------------------------------------
# Shared kernel math
# ---------------------------------------------------------------------------

def _fused_step(x, h, wx, wh, b, hidden_size, out_size):
    """z = x @ Wx + h @ Wh + b  (fused i2h|i2o along fan_out, lane padded).

    Returns (z, out_slab) where out_slab has masked log-softmax applied to the
    logit columns [hidden, hidden+out) and the raw hidden values elsewhere.
    """
    z = jnp.dot(x, wx, preferred_element_type=jnp.float32)
    z = z + jnp.dot(h, wh, preferred_element_type=jnp.float32)
    z = z + b

    col = lax.broadcasted_iota(jnp.int32, z.shape, 1)
    is_logit = (col >= hidden_size) & (col < hidden_size + out_size)

    zl = jnp.where(is_logit, z, -jnp.inf)                 # mask non-logit lanes
    m = jnp.max(zl, axis=1, keepdims=True)
    lse = jnp.log(jnp.sum(jnp.exp(zl - m), axis=1, keepdims=True))
    out_slab = jnp.where(is_logit, z - m - lse, z)
    return z, out_slab


# ---------------------------------------------------------------------------
# Kernels
# ---------------------------------------------------------------------------

def rnn_step_kernel(x_ref, h_ref, wx_ref, wh_ref, b_ref, out_ref, *,
                    hidden_size, out_size):
    """Single RNN step; one (B, NP) lane-dense output slab."""
    _, out_slab = _fused_step(x_ref[...], h_ref[...], wx_ref[...], wh_ref[...],
                              b_ref[...], hidden_size, out_size)
    out_ref[...] = out_slab.astype(out_ref.dtype)


def rnn_seq_kernel(x_ref, h0_ref, wx_ref, wh_ref, b_ref, out_ref, state_ref, *,
                   hidden_size, out_size):
    """Whole T-step recurrence inside one pallas_call (grid=(T,)).

    state_ref (VMEM scratch, (B, NP)) carries the recurrent state; Wh is
    zero-padded to (NP, NP) rows so stale logit/pad columns of the state
    contribute nothing to the next step. Weights use constant block indices
    and therefore stay resident in VMEM across the grid.
    """
    t = pl.program_id(0)

    @pl.when(t == 0)
    def _():
        state_ref[...] = h0_ref[...]

    z, out_slab = _fused_step(x_ref[...], state_ref[...], wx_ref[...],
                              wh_ref[...], b_ref[...], hidden_size, out_size)
    state_ref[...] = z                       # raw pre-softmax slab is the new state
    out_ref[...] = out_slab.astype(out_ref.dtype)


# ---------------------------------------------------------------------------
# Weight prep + wrappers
# ---------------------------------------------------------------------------

def _prep_weights(w_i2h, b_i2h, w_i2o, b_i2o, in_size, hidden_size, out_size):
    """Split into x-/h- parts, fuse i2h|i2o along fan_out, pad fan_out to 128."""
    n = hidden_size + out_size
    np_ = _round_up(n, LANE)
    wx = jnp.zeros((in_size, np_), jnp.float32)
    wx = wx.at[:, :hidden_size].set(w_i2h[:in_size])
    wx = wx.at[:, hidden_size:n].set(w_i2o[:in_size])
    wh = jnp.zeros((hidden_size, np_), jnp.float32)
    wh = wh.at[:, :hidden_size].set(w_i2h[in_size:])
    wh = wh.at[:, hidden_size:n].set(w_i2o[in_size:])
    b = jnp.zeros((1, np_), jnp.float32)
    b = b.at[0, :hidden_size].set(b_i2h)
    b = b.at[0, hidden_size:n].set(b_i2o)
    return wx, wh, b, np_


def rnn_forward(input_tensor, hidden_tensor, w_i2h, b_i2h, w_i2o, b_i2o):
    """Pallas-backed equivalent of RNN.forward (single step).

    w_i2h: (in+hidden, hidden)   b_i2h: (hidden,)
    w_i2o: (in+hidden, out)      b_i2o: (out,)
    Returns (log_probs (B, out), hidden (B, hidden)).
    """
    B, in_size = input_tensor.shape
    hidden_size = hidden_tensor.shape[1]
    out_size = w_i2o.shape[1]

    wx, wh, b, np_ = _prep_weights(w_i2h, b_i2h, w_i2o, b_i2o,
                                   in_size, hidden_size, out_size)

    bp = _round_up(max(B, SUBLANE), SUBLANE)
    x = jnp.pad(input_tensor, ((0, bp - B), (0, 0)))
    h = jnp.pad(hidden_tensor, ((0, bp - B), (0, 0)))

    vmem = pl.BlockSpec(memory_space=pltpu.MemorySpace.VMEM)
    kernel = functools.partial(rnn_step_kernel,
                               hidden_size=hidden_size, out_size=out_size)
    slab = pl.pallas_call(
        kernel,
        out_shape=jax.ShapeDtypeStruct((bp, np_), jnp.float32),
        in_specs=[vmem, vmem, vmem, vmem, vmem],
        out_specs=vmem,
    )(x, h, wx, wh, b)

    output = slab[:B, hidden_size:hidden_size + out_size]
    hidden = slab[:B, :hidden_size]
    return output, hidden


def rnn_forward_sequence(xs, h0, w_i2h, b_i2h, w_i2o, b_i2o):
    """Run T RNN steps inside one pallas_call.

    xs: (T, B, in_size), h0: (B, hidden).
    Returns (log_probs (T, B, out), final hidden (B, hidden)).
    """
    T, B, in_size = xs.shape
    hidden_size = h0.shape[1]
    out_size = w_i2o.shape[1]

    wx, wh, b, np_ = _prep_weights(w_i2h, b_i2h, w_i2o, b_i2o,
                                   in_size, hidden_size, out_size)
    # Pad Wh rows to NP so the padded (B, NP) recurrent state multiplies it
    # directly; extra rows are zero, so stale logit/pad columns are ignored.
    wh_pad = jnp.zeros((np_, np_), jnp.float32).at[:hidden_size].set(wh)

    bp = _round_up(max(B, SUBLANE), SUBLANE)
    xs_p = jnp.pad(xs, ((0, 0), (0, bp - B), (0, 0)))
    h0_p = jnp.pad(h0, ((0, bp - B), (0, np_ - hidden_size)))

    kernel = functools.partial(rnn_seq_kernel,
                               hidden_size=hidden_size, out_size=out_size)
    grid_spec = pltpu.PrefetchScalarGridSpec(
        num_scalar_prefetch=0,
        grid=(T,),
        in_specs=[
            pl.BlockSpec((None, bp, in_size), lambda t: (t, 0, 0)),   # x_t
            pl.BlockSpec((bp, np_), lambda t: (0, 0)),                # h0 (resident)
            pl.BlockSpec((in_size, np_), lambda t: (0, 0)),           # Wx (resident)
            pl.BlockSpec((np_, np_), lambda t: (0, 0)),               # Wh (resident)
            pl.BlockSpec((1, np_), lambda t: (0, 0)),                 # bias (resident)
        ],
        out_specs=pl.BlockSpec((None, bp, np_), lambda t: (t, 0, 0)),
        scratch_shapes=[pltpu.VMEM((bp, np_), jnp.float32)],
    )
    slab = pl.pallas_call(
        kernel,
        out_shape=jax.ShapeDtypeStruct((T, bp, np_), jnp.float32),
        grid_spec=grid_spec,
        compiler_params=pltpu.CompilerParams(
            dimension_semantics=("arbitrary",)),   # sequential recurrence
    )(xs_p, h0_p, wx, wh_pad, b)

    outputs = slab[:, :B, hidden_size:hidden_size + out_size]
    hidden_final = slab[T - 1, :B, :hidden_size]
    return outputs, hidden_final


def init_params(key, in_size, hidden_size, out_size):
    """Deterministic init mimicking nn.Linear default (U(-1/sqrt(fan_in), ...)).
    Weights stored pre-transposed as (fan_in, fan_out)."""
    fan_in = in_size + hidden_size
    bound = 1.0 / jnp.sqrt(jnp.float32(fan_in))
    k1, k2, k3, k4 = jax.random.split(key, 4)
    w_i2h = jax.random.uniform(k1, (fan_in, hidden_size), jnp.float32, -bound, bound)
    b_i2h = jax.random.uniform(k2, (hidden_size,), jnp.float32, -bound, bound)
    w_i2o = jax.random.uniform(k3, (fan_in, out_size), jnp.float32, -bound, bound)
    b_i2o = jax.random.uniform(k4, (out_size,), jnp.float32, -bound, bound)
    return w_i2h, b_i2h, w_i2o, b_i2o


if __name__ == "__main__":
    B, in_size, hidden_size, out_size, T = 2, 16, 32, 8, 8

    key = jax.random.PRNGKey(0)
    kp, kx, ks = jax.random.split(key, 3)
    w_i2h, b_i2h, w_i2o, b_i2o = init_params(kp, in_size, hidden_size, out_size)

    x = jax.random.normal(kx, (B, in_size), jnp.float32)
    h0 = jnp.zeros((B, hidden_size), jnp.float32)   # RNN.init_hidden broadcast to batch

    # --- single step (matches the PyTorch module forward) ---
    out, hid = rnn_forward(x, h0, w_i2h, b_i2h, w_i2o, b_i2o)
    jax.block_until_ready((out, hid))

    conc = jnp.concatenate([x, h0], axis=1)
    hid_ref = conc @ w_i2h + b_i2h
    out_ref = jax.nn.log_softmax(conc @ w_i2o + b_i2o, axis=1)
    assert jnp.allclose(out, out_ref, atol=1e-4), "step output mismatch"
    assert jnp.allclose(hid, hid_ref, atol=1e-4), "step hidden mismatch"

    # --- full sequence, recurrence inside one pallas_call ---
    xs = jax.random.normal(ks, (T, B, in_size), jnp.float32)
    outs, h_final = rnn_forward_sequence(xs, h0, w_i2h, b_i2h, w_i2o, b_i2o)
    jax.block_until_ready((outs, h_final))

    h = h0
    for t in range(T):
        conc = jnp.concatenate([xs[t], h], axis=1)
        h = conc @ w_i2h + b_i2h
        o = jax.nn.log_softmax(conc @ w_i2o + b_i2o, axis=1)
        assert jnp.allclose(outs[t], o, atol=1e-4), f"seq output mismatch at t={t}"
    assert jnp.allclose(h_final, h, atol=1e-4), "seq final hidden mismatch"

    print("KERNEL_OK")
</pallas_src>

<mosaic_0001>
module attributes {stable_mosaic.version = 11 : i64} {
  func.func @rnn_step_kernel(%arg0: memref<8x16xf32, #tpu.memory_space<vmem>>, %arg1: memref<8x32xf32, #tpu.memory_space<vmem>>, %arg2: memref<16x128xf32, #tpu.memory_space<vmem>>, %arg3: memref<32x128xf32, #tpu.memory_space<vmem>>, %arg4: memref<1x128xf32, #tpu.memory_space<vmem>>, %arg5: memref<8x128xf32, #tpu.memory_space<vmem>>) attributes {dimension_semantics = [], scalar_prefetch = 0 : i64, scratch_operands = 0 : i64, tpu.core_type = #tpu.core_type<tc>} {
    %c0 = arith.constant 0 : index
    %c0_0 = arith.constant 0 : index
    %0 = vector.load %arg0[%c0, %c0_0] : memref<8x16xf32, #tpu.memory_space<vmem>>, vector<8x16xf32>
    %c0_1 = arith.constant 0 : index
    %c0_2 = arith.constant 0 : index
    %1 = vector.load %arg1[%c0_1, %c0_2] : memref<8x32xf32, #tpu.memory_space<vmem>>, vector<8x32xf32>
    %c0_3 = arith.constant 0 : index
    %c0_4 = arith.constant 0 : index
    %2 = vector.load %arg2[%c0_3, %c0_4] : memref<16x128xf32, #tpu.memory_space<vmem>>, vector<16x128xf32>
    %c0_5 = arith.constant 0 : index
    %c0_6 = arith.constant 0 : index
    %3 = vector.load %arg3[%c0_5, %c0_6] : memref<32x128xf32, #tpu.memory_space<vmem>>, vector<32x128xf32>
    %c0_7 = arith.constant 0 : index
    %c0_8 = arith.constant 0 : index
    %4 = vector.load %arg4[%c0_7, %c0_8] : memref<1x128xf32, #tpu.memory_space<vmem>>, vector<1x128xf32>
    %cst = arith.constant dense<0.000000e+00> : vector<8x128xf32>
    %5 = tpu.matmul %0, %2, %cst {dimension_numbers = #tpu.dot_dimension_numbers<[1], [0], [0], [1], [0, 0, 1, 1], [], []>} : vector<8x16xf32>, vector<16x128xf32>, vector<8x128xf32> -> vector<8x128xf32>
    %cst_9 = arith.constant dense<0.000000e+00> : vector<8x128xf32>
    %6 = tpu.matmul %1, %3, %cst_9 {dimension_numbers = #tpu.dot_dimension_numbers<[1], [0], [0], [1], [0, 0, 1, 1], [], []>} : vector<8x32xf32>, vector<32x128xf32>, vector<8x128xf32> -> vector<8x128xf32>
    %7 = arith.addf %5, %6 : vector<8x128xf32>
    %8 = vector.broadcast %4 : vector<1x128xf32> to vector<8x128xf32>
    %9 = arith.addf %7, %8 : vector<8x128xf32>
    %10 = tpu.iota {dimensions = array<i32: 1>} : vector<8x128xi32>
    %c32_i32 = arith.constant 32 : i32
    %11 = vector.broadcast %c32_i32 : i32 to vector<8x128xi32>
    %12 = arith.cmpi sge, %10, %11 : vector<8x128xi32>
    %c40_i32 = arith.constant 40 : i32
    %13 = vector.broadcast %c40_i32 : i32 to vector<8x128xi32>
    %14 = arith.cmpi slt, %10, %13 : vector<8x128xi32>
    %15 = arith.andi %12, %14 : vector<8x128xi1>
    %cst_10 = arith.constant 0xFF800000 : f32
    %16 = vector.broadcast %cst_10 : f32 to vector<8x128xf32>
    %17 = arith.select %15, %9, %16 : vector<8x128xi1>, vector<8x128xf32>
    %cst_11 = arith.constant dense<0xFF800000> : vector<8xf32>
    %18 = vector.multi_reduction <maximumf>, %17, %cst_11 [1] : vector<8x128xf32> to vector<8xf32>
    %19 = vector.shape_cast %18 : vector<8xf32> to vector<8x1xf32>
    %20 = vector.broadcast %19 : vector<8x1xf32> to vector<8x128xf32>
    %21 = arith.subf %17, %20 : vector<8x128xf32>
    %22 = math.exp %21 : vector<8x128xf32>
    %cst_12 = arith.constant dense<0.000000e+00> : vector<8xf32>
    %23 = vector.multi_reduction <add>, %22, %cst_12 [1] : vector<8x128xf32> to vector<8xf32>
    %24 = vector.shape_cast %23 : vector<8xf32> to vector<8x1xf32>
    %25 = math.log %24 : vector<8x1xf32>
    %26 = vector.broadcast %19 : vector<8x1xf32> to vector<8x128xf32>
    %27 = arith.subf %9, %26 : vector<8x128xf32>
    %28 = vector.broadcast %25 : vector<8x1xf32> to vector<8x128xf32>
    %29 = arith.subf %27, %28 : vector<8x128xf32>
    %30 = arith.select %15, %29, %9 : vector<8x128xi1>, vector<8x128xf32>
    %c0_13 = arith.constant 0 : index
    %c0_14 = arith.constant 0 : index
    %31 = vector.load %arg5[%c0_13, %c0_14] : memref<8x128xf32, #tpu.memory_space<vmem>>, vector<8x128xf32>
    tpu.vector_store %arg5[%c0_13, %c0_14], %30 {strides = array<i32>} : memref<8x128xf32, #tpu.memory_space<vmem>>, vector<8x128xf32>,
    return
  }
}

</mosaic_0001>

<bundles_post_ra>
// kernel: tpu_custom_call.1
= control target key start
LH: loop header
LB: loop body
LE: loop exit
PB: predicated region body
PF: predicated region fallthrough
CT: control target
= control target key end

     0   :  { %10 = vsyncpa [#allocation3], 0  ;;  %s553_s0 = inlined_call_operand.hbm [shape: f32[8,16], index: 0, kind: input, shape index: {}]   ;;  %s554_s1 = inlined_call_operand.hbm [shape: f32[8,32], index: 1, kind: input, shape index: {}]   ;;  %s555_s2 = inlined_call_operand.hbm [shape: f32[16,128], index: 2, kind: input, shape index: {}]   ;;  %s556_s3 = inlined_call_operand.hbm [shape: f32[32,128], index: 3, kind: input, shape index: {}]   ;;  %s557_s4 = inlined_call_operand.vmem [shape: f32[1,128], index: 4, kind: input, shape index: {}]   ;;  %s558_s5 = inlined_call_operand.hbm [shape: f32[8,128], index: 5, kind: output, shape index: {}]  }
   0x1   :  { %11 = vsyncpa [#allocation6], 0 }
   0x2   :  { %12 = vsyncpa [#allocation9], 0 }
   0x3   :  { %13 = vsyncpa [#allocation4], 0  ;;  %s442_s18 = smov [#allocation5]   ;;  %s443_s20 = smov [#allocation2]  }
   0x4   :  { %s30_s19 = sshll.u32 %s442_s18, 4  ;;  %s20_s21 = sshll.u32 %s443_s20, 4  ;;  %s31_s19 = int_to_ptr.vmem [resolvable:$true] %s30_s19  ;;  %s21_s21 = int_to_ptr.vmem [resolvable:$true] %s20_s21 }
   0x5   :  { %s324_s24 = scalar_lea.hbm %s554_s1, 128 }
   0x6   :  { %p325_p0 = scmp.ne.s32.totalorder %s554_s1, %s324_s24  ;;  %p328_p1 = scmp.lt.u32.totalorder %s324_s24, %s554_s1 }
   0x8   :  { %p330_p2 = pnand %p328_p1, %p325_p0 }
   0xa   :  { %333 = shalt.err (!%p330_p2)
}
   0xb   :  { %s334_s29 = scalar_lea.vmem %s31_s19, 128  ;;  %p339_p4 = scmp.lt.s32.totalorder %s31_s19, %s31_s19 }
   0xc   :  { %p335_p3 = scmp.ne.s32.totalorder %s31_s19, %s334_s29  ;;  %p340_p5 = scmp.lt.s32.totalorder %s334_s29, %s334_s29 }
   0xe   :  { %p341_p6 = por %p340_p5, %p339_p4 }
  0x10   :  { %p342_p7 = pnand %p341_p6, %p335_p3 }
  0x12   :  { %345 = shalt.err (!%p342_p7)
}
  0x13   :  { %33 = dma.hbm_to_vmem [thread:$0]  %s554_s1, 128, %s31_s19, [#allocation6]  }
  0x14   :  { %s346_s9 = scalar_lea.hbm %s553_s0, 128 }
  0x15   :  { %p347_p8 = scmp.ne.s32.totalorder %s553_s0, %s346_s9  ;;  %p350_p9 = scmp.lt.u32.totalorder %s346_s9, %s553_s0 }
  0x17   :  { %p352_p10 = pnand %p350_p9, %p347_p8 }
  0x19   :  { %355 = shalt.err (!%p352_p10)
}
  0x1a   :  { %s356_s14 = scalar_lea.vmem %s21_s21, 128  ;;  %p361_p12 = scmp.lt.s32.totalorder %s21_s21, %s21_s21 }
  0x1b   :  { %p357_p11 = scmp.ne.s32.totalorder %s21_s21, %s356_s14  ;;  %p362_p13 = scmp.lt.s32.totalorder %s356_s14, %s356_s14 }
  0x1d   :  { %p363_p0 = por %p362_p13, %p361_p12 }
  0x1f   :  { %p364_p1 = pnand %p363_p0, %p357_p11 }
  0x21   :  { %367 = shalt.err (!%p364_p1)
}
  0x22   :  { %23 = dma.hbm_to_vmem [thread:$0]  %s553_s0, 128, %s21_s21, [#allocation3]  }
  0x23   :  { %s444_s16 = smov [#allocation7]   ;;  %s368_s20 = scalar_lea.hbm %s555_s2, 256 }
  0x24   :  { %s39_s17 = sshll.u32 %s444_s16, 4  ;;  %p369_p2 = scmp.ne.s32.totalorder %s555_s2, %s368_s20  ;;  %s40_s17 = int_to_ptr.vmem [resolvable:$true] %s39_s17 }
  0x25   :  { %p372_p3 = scmp.lt.u32.totalorder %s368_s20, %s555_s2 }
  0x27   :  { %p374_p4 = pnand %p372_p3, %p369_p2 }
  0x29   :  { %377 = shalt.err (!%p374_p4)
}
  0x2a   :  { %s378_s26 = scalar_lea.vmem %s40_s17, 256  ;;  %p383_p6 = scmp.lt.s32.totalorder %s40_s17, %s40_s17 }
  0x2b   :  { %p379_p5 = scmp.ne.s32.totalorder %s40_s17, %s378_s26  ;;  %p384_p7 = scmp.lt.s32.totalorder %s378_s26, %s378_s26 }
  0x2d   :  { %p385_p8 = por %p384_p7, %p383_p6 }
  0x2f   :  { %p386_p9 = pnand %p385_p8, %p379_p5 }
  0x31   :  { %389 = shalt.err (!%p386_p9)
}
  0x32   :  { %s445_s0 = smov 128   ;;  %s446_s21 = smov 8  }
  0x33   :  { %45 = dma.hbm_to_vmem [thread:$0]  %s555_s2, 256, %s40_s17, [#allocation6], %s445_s0, %s445_s0, %s446_s21  }
  0x34   :  { %s447_s29 = smov [#allocation8]   ;;  %s390_s8 = scalar_lea.hbm %s556_s3, 512 }
  0x35   :  { %s51_s30 = sshll.u32 %s447_s29, 4  ;;  %p391_p10 = scmp.ne.s32.totalorder %s556_s3, %s390_s8  ;;  %s52_s30 = int_to_ptr.vmem [resolvable:$true] %s51_s30 }
  0x36   :  { %p394_p11 = scmp.lt.u32.totalorder %s390_s8, %s556_s3 }
  0x38   :  { %p396_p12 = pnand %p394_p11, %p391_p10 }
  0x3a   :  { %399 = shalt.err (!%p396_p12)
}
  0x3b   :  { %s400_s13 = scalar_lea.vmem %s52_s30, 512  ;;  %p405_p0 = scmp.lt.s32.totalorder %s52_s30, %s52_s30 }
  0x3c   :  { %p401_p13 = scmp.ne.s32.totalorder %s52_s30, %s400_s13  ;;  %p406_p1 = scmp.lt.s32.totalorder %s400_s13, %s400_s13 }
  0x3e   :  { %p407_p2 = por %p406_p1, %p405_p0 }
  0x40   :  { %p408_p3 = pnand %p407_p2, %p401_p13 }
  0x42   :  { %411 = shalt.err (!%p408_p3)
}
  0x43   :  { %57 = dma.hbm_to_vmem [thread:$0]  %s556_s3, 512, %s52_s30, [#allocation9], %s445_s0, %s445_s0, %s446_s21  }
  0x44   :  { %434 = dma.done.wait [#allocation3], 128  }
  0x45   :  { %435 = vsyncadd [#allocation3], 4294967168 }
  0x46   :  { %436 = dma.done.wait [#allocation6], 384  }
  0x47   :  { %437 = vsyncadd [#allocation6], 4294966912 }
  0x48   :  { %438 = dma.done.wait [#allocation9], 512  }
  0x49   :  { %439 = vsyncadd [#allocation9], 4294966784  ;;  %v448_v0 = vmov 0.0|0.0   ;;  %vm449_vm0 = vmmov 0   ;;  %v450_v1 = vmov 0.0   ;;  %v76_v2 = vld [vmem:[#allocation8] sm:$0xff]  ;;  %v236_v13 = vlaneseq }
  0x4a   :  { %301 = vmatprep.subr.bf16.mxu0 %v448_v0  ;;  %307 = vmatprep.subr.bf16.mxu1 %v448_v0  ;;  %v77_v3 = vld [vmem:[#allocation8 + $0x8] sm:$0xff]  ;;  %v74_v4 = vld [vmem:[#allocation7] sm:$0xff]  ;;  %v75_v6 = vld [vmem:[#allocation7 + $0x8] sm:$0xff]  ;;  %vm155_vm1 = vcmask 130048   ;;  %vm81_vm2 = vcmask 261120  }
  0x4b   :  { %298 = vmatprep.mubr.msk.f32.mxu1 %vm449_vm0, %v450_v1  ;;  %291 = vmatprep.mubr.msk.f32.mxu0 %vm449_vm0, %v450_v1  ;;  %v302_v5 = vpack.c.bf16 %v77_v3, %v76_v2  ;;  %v78_v7 = vld [vmem:[#allocation8 + $0x10] sm:$0xff]  ;;  %v79_v8 = vld [vmem:[#allocation8 + $0x18] sm:$0xff]  ;;  %v308_v9 = vpack.c.bf16 %v75_v6, %v74_v4  ;;  %v72_v11 = vld [vmem:[#allocation2] sm:$0xff]  ;;  %v237_v14 = vand.u32 127, %v236_v13 }
  0x4c   :  { %v305_v10 = vpack.c.bf16 %v79_v8, %v78_v7  ;;  %v73_v12 = vld [vmem:[#allocation5] sm:$0xff]  ;;  %v274_v17 = vld [vmem:[%s557_s4] ss:$0 sm:$0xff]  ;;  %s451_s4 = smov [#allocation10]  }
  0x4d   :  { %303 = vmatpush3.bf16.msra.mxu0 %v302_v5  ;;  %309 = vmatpush3.bf16.msra.mxu1 %v308_v9  ;;  %vm238_vm3 = vcmp.ge.s32.totalorder %v237_v14, 32  ;;  %vm239_vm4 = vcmp.lt.s32.totalorder %v237_v14, 40  ;;  %s261_s15 = sshll.u32 %s451_s4, 4  ;;  %s262_s15 = int_to_ptr.vmem [resolvable:$true] %s261_s15 }
  0x4e   :  { %304 = vmatprep.subr.bf16.mxu0 %v448_v0  ;;  %vm533_vm5 = vmand %vm238_vm3, %vm239_vm4  ;;  %s412_s16 = scalar_lea.vmem %s262_s15, 128  ;;  %p417_p5 = scmp.lt.s32.totalorder %s262_s15, %s262_s15 }
  0x4f   :  { %p413_p4 = scmp.ne.s32.totalorder %s262_s15, %s412_s16  ;;  %p418_p6 = scmp.lt.s32.totalorder %s412_s16, %s412_s16 }
  0x50   :  { %299 = vmatmul.mubr.msk.f32.vlgmr.msra.gmra.mrb[0].mxu1 %vm155_vm1, %v72_v11 }
  0x51   :  { %306 = vmatpush3.bf16.msra.mxu0 %v305_v10  ;;  %p419_p7 = por %p418_p6, %p417_p5 }
  0x53   :  { %p420_p8 = pnand %p419_p7, %p413_p4 }
  0x54   :  { %292 = vmatmul.mubr.msk.f32.vlgmr.msra.gmra.mrb[0].mxu0 %vm81_vm2, %v73_v12 }
 0x123   :  { %v225_v15 = vpop.f32.mrb[0].mxu1 }
 0x124   :  { %v300_v16 = vpop.f32.mrb[1].mxu1 }
 0x127   :  { %v151_v18 = vpop.f32.mrb[0].mxu0 }
 0x128   :  { %v226_v19 = vadd.f32 %v225_v15, %v151_v18  ;;  %v293_v20 = vpop.f32.mrb[1].mxu0 }
 0x12a   :  { %v235_v22 = vadd.f32 %v274_v17, %v226_v19 }
 0x12c   :  { %v241_v23 = vsel %vm533_vm5, %v235_v22, -inf }
 0x12d   :  { %242 = vmax.xlane.f32.xlu0 %v241_v23 }
 0x1ba   :  { %v243_v24 = vpop.xlane.xlu0 %242 }
 0x1bb   :  { %v244_v25 = vsub.f32 %v241_v23, %v243_v24  ;;  %v251_v30 = vsub.f32 %v235_v22, %v243_v24 }
 0x1bd   :  { %v245_v26 = vmul.f32 1.442695, %v244_v25 }
 0x1bf   :  { %320 = vpow2.f32 %v245_v26 }
 0x1c9   :  { %v321_v27 = vpop.eup %320 }
 0x1ca   :  { %247 = vadd.xlane.f32.xlu0 %v321_v27 }
 0x257   :  { %v248_v28 = vpop.xlane.xlu0 %247 }
 0x258   :  { %322 = vlog2.f32 %v248_v28 }
 0x262   :  { %v323_v29 = vpop.eup %322 }
 0x263   :  { %v250_v31 = vmul.f32 0.6931472, %v323_v29 }
 0x265   :  { %v252_v32 = vsub.f32 %v251_v30, %v250_v31 }
 0x267   :  { %v253_v33 = vsel %vm533_vm5, %v252_v32, %v235_v22 }
 0x268   :  { %254 = vst [vmem:[#allocation10] sm:$0xff] %v253_v33 }
 0x269   :  { %423 = shalt.err (!%p420_p8)
}
 0x26a   :  { %s424_s19 = scalar_lea.hbm %s558_s5, 128 }
 0x26b   :  { %p425_p9 = scmp.ne.s32.totalorder %s558_s5, %s424_s19  ;;  %p428_p10 = scmp.lt.u32.totalorder %s424_s19, %s558_s5 }
 0x26d   :  { %p430_p11 = pnand %p428_p10, %p425_p9 }
 0x26f   :  { %433 = shalt.err (!%p430_p11)
}
 0x270   :  { %264 = dma.vmem_to_hbm [thread:$0]  %s262_s15, 128, %s558_s5, [#allocation4]  }
 0x271   :  { %440 = dma.done.wait [#allocation4], 128  }
 0x272   :  { %441 = vsyncadd [#allocation4], 4294967168 }
 0x273   :  { %268 = vsyncpa [#allocation3], 1 }
 0x274   :  { %269 = vsyncpa [#allocation6], 1 }
 0x275   :  { %270 = vsyncpa [#allocation9], 1 }
 0x276   :  { %271 = vsyncpa [#allocation4], 1 }

</bundles_post_ra>
